<compile_context>
chip_gen: v7x
topology: tpu7x:2x2x1
jax: 0.10.0
libtpu: 0.0.40
codegen_flags: <defaults>
</compile_context>

<pallas_src>
import math

import jax
import jax.numpy as jnp
from jax.experimental import pallas as pl
from jax.experimental.pallas import tpu as pltpu


# ----------------------------- model config ---------------------------------
# Small shapes consistent with the module (original: d_input=20, ctx=10,
# d_model=256, n_layers=12 — scaled down for this synthetic run).
CONTEXT_LENGTH = 4
D_INPUT = 5
D_MODEL = 32
N_LAYERS = 2
D_STATE = 16
D_CONV = 4
EXPAND = 2

D_INNER = EXPAND * D_MODEL                              # 64
DT_RANK = math.ceil(D_MODEL / 16)                       # 2
INPUT_DIM = CONTEXT_LENGTH * (D_INPUT + 1) + D_INPUT    # 29
BATCH = 8                                               # toy; multiple of 8

assert N_LAYERS >= 2, "kernel layout assumes at least 2 layers"


def _silu_exact(x):
    # exact reciprocal on the u path (feeds delta / B / C projections).
    return x * pl.reciprocal(1.0 + jnp.exp(-x), approx=False)


def _silu_approx(x):
    # approximate EUP reciprocal is fine for the output gate z.
    return x * pl.reciprocal(1.0 + jnp.exp(-x), approx=True)


def _softplus(x):
    # matches torch.nn.functional.softplus (threshold=20)
    return jnp.where(x > 20.0, x, jnp.log1p(jnp.exp(x)))


# ------------------------------ fused kernel ---------------------------------
def fused_forward_kernel(
    x_ref,            # (TILE_B, INPUT_DIM)
    in_w_ref,         # (INPUT_DIM, D_MODEL)
    biases_ref,       # (8, D_MODEL): row 0 = in_b, [1, 0] = out_b
    w_in_ref,         # (L, D_MODEL, 2*D_INNER)  x-half pre-scaled by conv tap
    w_delta_ref,      # (L, D_INNER, D_INNER)    = x_proj[:, :dt_rank] @ dt_proj
    w_bc_ref,         # (L, D_INNER, 2*D_STATE)  = [w_B | w_C]
    vecs_ref,         # (L, 8, D_INNER): rows 0=b_conv, 1=b_dt, 2=D
    w_out_ref,        # (L-1, D_INNER, D_MODEL)  out_proj for layers 0..L-2
    w_out_last_ref,   # (1, D_INNER)             = (w_out[L-1] @ out_w).T
    o_ref,            # (TILE_B, 1)
):
    in_b = biases_ref[0:1, :]
    out_b = biases_ref[1:2, 0:1]

    # input_proj
    h = (
        jnp.dot(x_ref[...], in_w_ref[...], preferred_element_type=jnp.float32)
        + in_b
    )

    # Mamba layers, unrolled (N_LAYERS small); h stays on-chip throughout.
    for l in range(N_LAYERS):
        pvec = vecs_ref[l]                    # (8, D_INNER)
        b_conv = pvec[0:1, :]
        b_dt = pvec[1:2, :]
        d_vec = pvec[2:3, :]

        # single fused in_proj matmul, split (x, z) afterwards; the x half's
        # columns were pre-scaled by the last causal-conv tap at build time.
        xz = jnp.dot(h, w_in_ref[l], preferred_element_type=jnp.float32)
        xc = xz[:, :D_INNER]
        z = xz[:, D_INNER:]

        # causal depthwise conv1d at seq_len == 1 (tap folded into w_in)
        u = _silu_exact(xc + b_conv)

        # constant-folded dt projection (no dt_rank lane slice, no K=2 matmul)
        delta = _softplus(
            jnp.dot(u, w_delta_ref[l], preferred_element_type=jnp.float32)
            + b_dt
        )

        # fused B/C projection, split afterwards
        bc_all = jnp.dot(u, w_bc_ref[l], preferred_element_type=jnp.float32)
        bm = bc_all[:, :D_STATE]
        cm = bc_all[:, D_STATE:]

        # single scan step with h_prev = 0:
        #   state = delta * B * u ; y = sum_s state * C + D * u
        # A_log only enters through exp(delta*A) * h_prev == 0 -> absent here.
        bc = jnp.sum(bm * cm, axis=-1, keepdims=True)        # (TILE_B, 1)
        y = u * (delta * bc + d_vec) * _silu_approx(z)

        if l < N_LAYERS - 1:
            h = jnp.dot(y, w_out_ref[l], preferred_element_type=jnp.float32)
        else:
            # last-layer out_proj folded with output_proj: VPU mul + XLU lane
            # reduce instead of an N=1 MXU matmul.
            o_ref[...] = (
                jnp.sum(y * w_out_last_ref[...], axis=-1, keepdims=True)
                + out_b
            )


# ------------------------------ wrapper --------------------------------------
def _fused_call(batch, tile_b):
    grid = (batch // tile_b,)
    weight_specs = [
        pl.BlockSpec((INPUT_DIM, D_MODEL), lambda i: (0, 0)),
        pl.BlockSpec((8, D_MODEL), lambda i: (0, 0)),
        pl.BlockSpec((N_LAYERS, D_MODEL, 2 * D_INNER), lambda i: (0, 0, 0)),
        pl.BlockSpec((N_LAYERS, D_INNER, D_INNER), lambda i: (0, 0, 0)),
        pl.BlockSpec((N_LAYERS, D_INNER, 2 * D_STATE), lambda i: (0, 0, 0)),
        pl.BlockSpec((N_LAYERS, 8, D_INNER), lambda i: (0, 0, 0)),
        pl.BlockSpec((N_LAYERS - 1, D_INNER, D_MODEL), lambda i: (0, 0, 0)),
        pl.BlockSpec((1, D_INNER), lambda i: (0, 0)),
    ]
    return pl.pallas_call(
        fused_forward_kernel,
        out_shape=jax.ShapeDtypeStruct((batch, 1), jnp.float32),
        grid=grid,
        in_specs=[pl.BlockSpec((tile_b, INPUT_DIM), lambda i: (i, 0))]
        + weight_specs,
        out_specs=pl.BlockSpec((tile_b, 1), lambda i: (i, 0)),
        compiler_params=pltpu.CompilerParams(
            # batch grid axis shards across v7x's two TensorCores
            dimension_semantics=("parallel",),
            # toy weights are tiny; re-derive per generation at the real
            # config (bf16 + ~32 MiB, or ~48 MiB cap on v7x's 64 MiB VMEM).
            vmem_limit_bytes=32 * 1024 * 1024,
        ),
    )


@jax.jit
def mamba_icl_forward(x, kp):
    assert x.shape[-1] == INPUT_DIM, (
        f"Input dim mismatch: expected {INPUT_DIM}, got {x.shape[-1]}"
    )
    batch = x.shape[0]
    tile_b = batch if batch <= 256 else 256
    assert batch % tile_b == 0, "toy wrapper assumes batch divisible by tile"
    return _fused_call(batch, tile_b)(
        x,
        kp["in_w"],
        kp["biases"],
        kp["w_in"],
        kp["w_delta"],
        kp["w_bc"],
        kp["vecs"],
        kp["w_out"],
        kp["w_out_last"],
    )


# --------------------------- parameter construction --------------------------
def init_raw_params(key):
    """Parameters in the original (PyTorch-like) layout."""

    def nrm(k, shape, scale):
        return (scale * jax.random.normal(k, shape)).astype(jnp.float32)

    keys = iter(jax.random.split(key, 4 + 8 * N_LAYERS))

    raw = {
        "in_w": nrm(next(keys), (INPUT_DIM, D_MODEL), 1.0 / math.sqrt(INPUT_DIM)),
        "in_b": nrm(next(keys), (1, D_MODEL), 0.02),
        "out_w": nrm(next(keys), (D_MODEL, 1), 1.0 / math.sqrt(D_MODEL)),
        "out_b": nrm(next(keys), (1, 1), 0.02),
        "layers": [],
    }
    for _ in range(N_LAYERS):
        layer = {
            "w_in": nrm(next(keys), (D_MODEL, 2 * D_INNER), 1.0 / math.sqrt(D_MODEL)),
            # full Conv1d weight (d_inner, d_conv); only the last tap is
            # reachable at seq_len == 1
            "conv_w": nrm(next(keys), (D_INNER, D_CONV), 1.0 / math.sqrt(D_CONV)),
            "b_conv": nrm(next(keys), (1, D_INNER), 0.02),
            "w_xproj": nrm(
                next(keys),
                (D_INNER, DT_RANK + 2 * D_STATE),
                1.0 / math.sqrt(D_INNER),
            ),
            "w_dt": nrm(next(keys), (DT_RANK, D_INNER), 1.0 / math.sqrt(DT_RANK)),
            "b_dt": nrm(next(keys), (1, D_INNER), 0.1),
            "D": jnp.ones((1, D_INNER), jnp.float32),
            "w_out": nrm(next(keys), (D_INNER, D_MODEL), 1.0 / math.sqrt(D_INNER)),
            # A_log would live here in the real module; it has exactly zero
            # contribution at seq_len == 1 (see kernel comment).
        }
        raw["layers"].append(layer)
    return raw


def build_kernel_params(raw):
    """Pre-split / constant-fold / pack weights into the fused-kernel layout."""
    layers = raw["layers"]

    # in_proj kept fused; x-half columns pre-scaled by the last conv tap.
    w_in_list = []
    for lp in layers:
        conv_last = lp["conv_w"][:, -1]                     # (D_INNER,)
        w_x = lp["w_in"][:, :D_INNER] * conv_last[None, :]  # fold conv scale
        w_z = lp["w_in"][:, D_INNER:]
        w_in_list.append(jnp.concatenate([w_x, w_z], axis=1))
    w_in = jnp.stack(w_in_list, axis=0)                     # (L, D_MODEL, 2*D_INNER)

    # constant-folded dt projection
    w_delta = jnp.stack(
        [lp["w_xproj"][:, :DT_RANK] @ lp["w_dt"] for lp in layers], axis=0
    )

    # fused [B | C] projection
    w_bc = jnp.stack([lp["w_xproj"][:, DT_RANK:] for lp in layers], axis=0)

    # pack small per-channel vectors: rows 0=b_conv, 1=b_dt, 2=D (padded to 8)
    vecs = jnp.zeros((N_LAYERS, 8, D_INNER), jnp.float32)
    for l, lp in enumerate(layers):
        vecs = vecs.at[l, 0].set(lp["b_conv"][0])
        vecs = vecs.at[l, 1].set(lp["b_dt"][0])
        vecs = vecs.at[l, 2].set(lp["D"][0])

    # out_proj for inner layers; last layer folded with the final output_proj.
    w_out = jnp.stack([layers[l]["w_out"] for l in range(N_LAYERS - 1)], axis=0)
    w_out_last = (layers[-1]["w_out"] @ raw["out_w"]).reshape(1, D_INNER)

    # pack the two scalar/bias inputs into one (8, D_MODEL) slab
    biases = jnp.zeros((8, D_MODEL), jnp.float32)
    biases = biases.at[0].set(raw["in_b"][0])
    biases = biases.at[1, 0].set(raw["out_b"][0, 0])

    return {
        "in_w": raw["in_w"],
        "biases": biases,
        "w_in": w_in,
        "w_delta": w_delta,
        "w_bc": w_bc,
        "vecs": vecs,
        "w_out": w_out,
        "w_out_last": w_out_last,
    }


# ------------------------- pure-JAX reference ---------------------------------
def reference_forward(x, raw):
    h = x @ raw["in_w"] + raw["in_b"]
    for lp in raw["layers"]:
        xz = h @ lp["w_in"]
        xc, z = xz[:, :D_INNER], xz[:, D_INNER:]
        u = xc * lp["conv_w"][:, -1][None, :] + lp["b_conv"]
        u = u * jax.nn.sigmoid(u)
        xdbl = u @ lp["w_xproj"]
        dt_pre = xdbl[:, :DT_RANK]
        bm = xdbl[:, DT_RANK : DT_RANK + D_STATE]
        cm = xdbl[:, DT_RANK + D_STATE :]
        delta = jax.nn.softplus(dt_pre @ lp["w_dt"] + lp["b_dt"])
        bc = jnp.sum(bm * cm, axis=-1, keepdims=True)
        y = (delta * u * bc + lp["D"] * u) * (z * jax.nn.sigmoid(z))
        h = y @ lp["w_out"]
    return h @ raw["out_w"] + raw["out_b"]


# ---------------------------------- main --------------------------------------
if __name__ == "__main__":
    key = jax.random.PRNGKey(0)
    pkey, xkey = jax.random.split(key)

    raw_params = init_raw_params(pkey)
    kernel_params = build_kernel_params(raw_params)
    x = jax.random.normal(xkey, (BATCH, INPUT_DIM), dtype=jnp.float32)

    out = mamba_icl_forward(x, kernel_params)
    jax.block_until_ready(out)

    assert out.shape == (BATCH, 1), out.shape
    assert bool(jnp.all(jnp.isfinite(out)))

    # Tolerance check, not bit-exact: constant-folded conv scale / dt
    # projection / out_proj change rounding order, and the z gate uses the
    # approximate EUP reciprocal.
    ref = reference_forward(x, raw_params)
    max_err = float(jnp.max(jnp.abs(out - ref)))
    assert jnp.allclose(out, ref, rtol=2e-2, atol=2e-2), max_err

    print("KERNEL_OK")
</pallas_src>

<mosaic_0001>
module attributes {stable_mosaic.version = 11 : i64} {
  func.func @fused_forward_kernel(%arg0: i32, %arg1: memref<8x29xf32, #tpu.memory_space<vmem>>, %arg2: memref<29x32xf32, #tpu.memory_space<vmem>>, %arg3: memref<8x32xf32, #tpu.memory_space<vmem>>, %arg4: memref<2x32x128xf32, #tpu.memory_space<vmem>>, %arg5: memref<2x64x64xf32, #tpu.memory_space<vmem>>, %arg6: memref<2x64x32xf32, #tpu.memory_space<vmem>>, %arg7: memref<2x8x64xf32, #tpu.memory_space<vmem>>, %arg8: memref<1x64x32xf32, #tpu.memory_space<vmem>>, %arg9: memref<1x64xf32, #tpu.memory_space<vmem>>, %arg10: memref<8x1xf32, #tpu.memory_space<vmem>>) attributes {dimension_semantics = [#tpu.dimension_semantics<parallel>], iteration_bounds = array<i64: 1>, scalar_prefetch = 0 : i64, scratch_operands = 0 : i64, tpu.core_type = #tpu.core_type<tc>, window_params = [{transform_indices = @transform_0, window_bounds = array<i64: 8, 29>}, {pipeline_mode = #tpu.pipeline_mode<synchronous>, transform_indices = @transform_1, window_bounds = array<i64: 29, 32>}, {pipeline_mode = #tpu.pipeline_mode<synchronous>, transform_indices = @transform_2, window_bounds = array<i64: 8, 32>}, {pipeline_mode = #tpu.pipeline_mode<synchronous>, transform_indices = @transform_3, window_bounds = array<i64: 2, 32, 128>}, {pipeline_mode = #tpu.pipeline_mode<synchronous>, transform_indices = @transform_4, window_bounds = array<i64: 2, 64, 64>}, {pipeline_mode = #tpu.pipeline_mode<synchronous>, transform_indices = @transform_5, window_bounds = array<i64: 2, 64, 32>}, {pipeline_mode = #tpu.pipeline_mode<synchronous>, transform_indices = @transform_6, window_bounds = array<i64: 2, 8, 64>}, {pipeline_mode = #tpu.pipeline_mode<synchronous>, transform_indices = @transform_7, window_bounds = array<i64: 1, 64, 32>}, {pipeline_mode = #tpu.pipeline_mode<synchronous>, transform_indices = @transform_8, window_bounds = array<i64: 1, 64>}, {transform_indices = @transform_9, window_bounds = array<i64: 8, 1>}]} {
    %c0 = arith.constant 0 : index
    %c0_0 = arith.constant 0 : index
    %0 = vector.load %arg3[%c0, %c0_0] : memref<8x32xf32, #tpu.memory_space<vmem>>, vector<1x32xf32>
    %c1 = arith.constant 1 : index
    %c0_1 = arith.constant 0 : index
    %1 = vector.load %arg3[%c1, %c0_1] : memref<8x32xf32, #tpu.memory_space<vmem>>, vector<1x1xf32>
    %c0_2 = arith.constant 0 : index
    %c0_3 = arith.constant 0 : index
    %2 = vector.load %arg1[%c0_2, %c0_3] : memref<8x29xf32, #tpu.memory_space<vmem>>, vector<8x29xf32>
    %c0_4 = arith.constant 0 : index
    %c0_5 = arith.constant 0 : index
    %3 = vector.load %arg2[%c0_4, %c0_5] : memref<29x32xf32, #tpu.memory_space<vmem>>, vector<29x32xf32>
    %cst = arith.constant dense<0.000000e+00> : vector<8x32xf32>
    %4 = tpu.matmul %2, %3, %cst {dimension_numbers = #tpu.dot_dimension_numbers<[1], [0], [0], [1], [0, 0, 1, 1], [], []>} : vector<8x29xf32>, vector<29x32xf32>, vector<8x32xf32> -> vector<8x32xf32>
    %5 = vector.broadcast %0 : vector<1x32xf32> to vector<8x32xf32>
    %6 = arith.addf %4, %5 : vector<8x32xf32>
    %c0_6 = arith.constant 0 : index
    %c0_7 = arith.constant 0 : index
    %c0_8 = arith.constant 0 : index
    %7 = vector.load %arg7[%c0_6, %c0_7, %c0_8] : memref<2x8x64xf32, #tpu.memory_space<vmem>>, vector<1x8x64xf32>
    %8 = vector.shape_cast %7 : vector<1x8x64xf32> to vector<8x64xf32>
    %9 = vector.extract_strided_slice %8 {offsets = [0, 0], sizes = [1, 64], strides = [1, 1]} : vector<8x64xf32> to vector<1x64xf32>
    %10 = vector.extract_strided_slice %8 {offsets = [1, 0], sizes = [1, 64], strides = [1, 1]} : vector<8x64xf32> to vector<1x64xf32>
    %11 = vector.extract_strided_slice %8 {offsets = [2, 0], sizes = [1, 64], strides = [1, 1]} : vector<8x64xf32> to vector<1x64xf32>
    %c0_9 = arith.constant 0 : index
    %c0_10 = arith.constant 0 : index
    %c0_11 = arith.constant 0 : index
    %12 = vector.load %arg4[%c0_9, %c0_10, %c0_11] : memref<2x32x128xf32, #tpu.memory_space<vmem>>, vector<1x32x128xf32>
    %13 = vector.shape_cast %12 : vector<1x32x128xf32> to vector<32x128xf32>
    %cst_12 = arith.constant dense<0.000000e+00> : vector<8x128xf32>
    %14 = tpu.matmul %6, %13, %cst_12 {dimension_numbers = #tpu.dot_dimension_numbers<[1], [0], [0], [1], [0, 0, 1, 1], [], []>} : vector<8x32xf32>, vector<32x128xf32>, vector<8x128xf32> -> vector<8x128xf32>
    %15 = vector.extract_strided_slice %14 {offsets = [0, 0], sizes = [8, 64], strides = [1, 1]} : vector<8x128xf32> to vector<8x64xf32>
    %16 = vector.extract_strided_slice %14 {offsets = [0, 64], sizes = [8, 64], strides = [1, 1]} : vector<8x128xf32> to vector<8x64xf32>
    %17 = vector.broadcast %9 : vector<1x64xf32> to vector<8x64xf32>
    %18 = arith.addf %15, %17 : vector<8x64xf32>
    %cst_13 = arith.constant 0.000000e+00 : f32
    %19 = vector.broadcast %cst_13 : f32 to vector<8x64xf32>
    %20 = arith.subf %19, %18 : vector<8x64xf32>
    %21 = math.exp %20 : vector<8x64xf32>
    %cst_14 = arith.constant 1.000000e+00 : f32
    %22 = vector.broadcast %cst_14 : f32 to vector<8x64xf32>
    %23 = arith.addf %22, %21 : vector<8x64xf32>
    %24 = tpu.reciprocal %23 : vector<8x64xf32> -> vector<8x64xf32>
    %25 = arith.mulf %18, %24 : vector<8x64xf32>
    %c0_15 = arith.constant 0 : index
    %c0_16 = arith.constant 0 : index
    %c0_17 = arith.constant 0 : index
    %26 = vector.load %arg5[%c0_15, %c0_16, %c0_17] : memref<2x64x64xf32, #tpu.memory_space<vmem>>, vector<1x64x64xf32>
    %27 = vector.shape_cast %26 : vector<1x64x64xf32> to vector<64x64xf32>
    %cst_18 = arith.constant dense<0.000000e+00> : vector<8x64xf32>
    %28 = tpu.matmul %25, %27, %cst_18 {dimension_numbers = #tpu.dot_dimension_numbers<[1], [0], [0], [1], [0, 0, 1, 1], [], []>} : vector<8x64xf32>, vector<64x64xf32>, vector<8x64xf32> -> vector<8x64xf32>
    %29 = vector.broadcast %10 : vector<1x64xf32> to vector<8x64xf32>
    %30 = arith.addf %28, %29 : vector<8x64xf32>
    %cst_19 = arith.constant 2.000000e+01 : f32
    %31 = vector.broadcast %cst_19 : f32 to vector<8x64xf32>
    %32 = arith.cmpf ogt, %30, %31 : vector<8x64xf32>
    %33 = math.exp %30 : vector<8x64xf32>
    %34 = math.log1p %33 : vector<8x64xf32>
    %35 = arith.select %32, %30, %34 : vector<8x64xi1>, vector<8x64xf32>
    %c0_20 = arith.constant 0 : index
    %c0_21 = arith.constant 0 : index
    %c0_22 = arith.constant 0 : index
    %36 = vector.load %arg6[%c0_20, %c0_21, %c0_22] : memref<2x64x32xf32, #tpu.memory_space<vmem>>, vector<1x64x32xf32>
    %37 = vector.shape_cast %36 : vector<1x64x32xf32> to vector<64x32xf32>
    %cst_23 = arith.constant dense<0.000000e+00> : vector<8x32xf32>
    %38 = tpu.matmul %25, %37, %cst_23 {dimension_numbers = #tpu.dot_dimension_numbers<[1], [0], [0], [1], [0, 0, 1, 1], [], []>} : vector<8x64xf32>, vector<64x32xf32>, vector<8x32xf32> -> vector<8x32xf32>
    %39 = vector.extract_strided_slice %38 {offsets = [0, 0], sizes = [8, 16], strides = [1, 1]} : vector<8x32xf32> to vector<8x16xf32>
    %40 = vector.extract_strided_slice %38 {offsets = [0, 16], sizes = [8, 16], strides = [1, 1]} : vector<8x32xf32> to vector<8x16xf32>
    %41 = arith.mulf %39, %40 : vector<8x16xf32>
    %cst_24 = arith.constant dense<0.000000e+00> : vector<8xf32>
    %42 = vector.multi_reduction <add>, %41, %cst_24 [1] : vector<8x16xf32> to vector<8xf32>
    %43 = vector.shape_cast %42 : vector<8xf32> to vector<8x1xf32>
    %44 = vector.broadcast %43 : vector<8x1xf32> to vector<8x64xf32>
    %45 = arith.mulf %35, %44 : vector<8x64xf32>
    %46 = vector.broadcast %11 : vector<1x64xf32> to vector<8x64xf32>
    %47 = arith.addf %45, %46 : vector<8x64xf32>
    %48 = arith.mulf %25, %47 : vector<8x64xf32>
    %cst_25 = arith.constant 0.000000e+00 : f32
    %49 = vector.broadcast %cst_25 : f32 to vector<8x64xf32>
    %50 = arith.subf %49, %16 : vector<8x64xf32>
    %51 = math.exp %50 : vector<8x64xf32>
    %cst_26 = arith.constant 1.000000e+00 : f32
    %52 = vector.broadcast %cst_26 : f32 to vector<8x64xf32>
    %53 = arith.addf %52, %51 : vector<8x64xf32>
    %54 = tpu.reciprocal %53 {approx = true} : vector<8x64xf32> -> vector<8x64xf32>
    %55 = arith.mulf %16, %54 : vector<8x64xf32>
    %56 = arith.mulf %48, %55 : vector<8x64xf32>
    %c0_27 = arith.constant 0 : index
    %c0_28 = arith.constant 0 : index
    %c0_29 = arith.constant 0 : index
    %57 = vector.load %arg8[%c0_27, %c0_28, %c0_29] : memref<1x64x32xf32, #tpu.memory_space<vmem>>, vector<1x64x32xf32>
    %58 = vector.shape_cast %57 : vector<1x64x32xf32> to vector<64x32xf32>
    %cst_30 = arith.constant dense<0.000000e+00> : vector<8x32xf32>
    %59 = tpu.matmul %56, %58, %cst_30 {dimension_numbers = #tpu.dot_dimension_numbers<[1], [0], [0], [1], [0, 0, 1, 1], [], []>} : vector<8x64xf32>, vector<64x32xf32>, vector<8x32xf32> -> vector<8x32xf32>
    %c1_31 = arith.constant 1 : index
    %c0_32 = arith.constant 0 : index
    %c0_33 = arith.constant 0 : index
    %60 = vector.load %arg7[%c1_31, %c0_32, %c0_33] : memref<2x8x64xf32, #tpu.memory_space<vmem>>, vector<1x8x64xf32>
    %61 = vector.shape_cast %60 : vector<1x8x64xf32> to vector<8x64xf32>
    %62 = vector.extract_strided_slice %61 {offsets = [0, 0], sizes = [1, 64], strides = [1, 1]} : vector<8x64xf32> to vector<1x64xf32>
    %63 = vector.extract_strided_slice %61 {offsets = [1, 0], sizes = [1, 64], strides = [1, 1]} : vector<8x64xf32> to vector<1x64xf32>
    %64 = vector.extract_strided_slice %61 {offsets = [2, 0], sizes = [1, 64], strides = [1, 1]} : vector<8x64xf32> to vector<1x64xf32>
    %c1_34 = arith.constant 1 : index
    %c0_35 = arith.constant 0 : index
    %c0_36 = arith.constant 0 : index
    %65 = vector.load %arg4[%c1_34, %c0_35, %c0_36] : memref<2x32x128xf32, #tpu.memory_space<vmem>>, vector<1x32x128xf32>
    %66 = vector.shape_cast %65 : vector<1x32x128xf32> to vector<32x128xf32>
    %cst_37 = arith.constant dense<0.000000e+00> : vector<8x128xf32>
    %67 = tpu.matmul %59, %66, %cst_37 {dimension_numbers = #tpu.dot_dimension_numbers<[1], [0], [0], [1], [0, 0, 1, 1], [], []>} : vector<8x32xf32>, vector<32x128xf32>, vector<8x128xf32> -> vector<8x128xf32>
    %68 = vector.extract_strided_slice %67 {offsets = [0, 0], sizes = [8, 64], strides = [1, 1]} : vector<8x128xf32> to vector<8x64xf32>
    %69 = vector.extract_strided_slice %67 {offsets = [0, 64], sizes = [8, 64], strides = [1, 1]} : vector<8x128xf32> to vector<8x64xf32>
    %70 = vector.broadcast %62 : vector<1x64xf32> to vector<8x64xf32>
    %71 = arith.addf %68, %70 : vector<8x64xf32>
    %cst_38 = arith.constant 0.000000e+00 : f32
    %72 = vector.broadcast %cst_38 : f32 to vector<8x64xf32>
    %73 = arith.subf %72, %71 : vector<8x64xf32>
    %74 = math.exp %73 : vector<8x64xf32>
    %cst_39 = arith.constant 1.000000e+00 : f32
    %75 = vector.broadcast %cst_39 : f32 to vector<8x64xf32>
    %76 = arith.addf %75, %74 : vector<8x64xf32>
    %77 = tpu.reciprocal %76 : vector<8x64xf32> -> vector<8x64xf32>
    %78 = arith.mulf %71, %77 : vector<8x64xf32>
    %c1_40 = arith.constant 1 : index
    %c0_41 = arith.constant 0 : index
    %c0_42 = arith.constant 0 : index
    %79 = vector.load %arg5[%c1_40, %c0_41, %c0_42] : memref<2x64x64xf32, #tpu.memory_space<vmem>>, vector<1x64x64xf32>
    %80 = vector.shape_cast %79 : vector<1x64x64xf32> to vector<64x64xf32>
    %cst_43 = arith.constant dense<0.000000e+00> : vector<8x64xf32>
    %81 = tpu.matmul %78, %80, %cst_43 {dimension_numbers = #tpu.dot_dimension_numbers<[1], [0], [0], [1], [0, 0, 1, 1], [], []>} : vector<8x64xf32>, vector<64x64xf32>, vector<8x64xf32> -> vector<8x64xf32>
    %82 = vector.broadcast %63 : vector<1x64xf32> to vector<8x64xf32>
    %83 = arith.addf %81, %82 : vector<8x64xf32>
    %cst_44 = arith.constant 2.000000e+01 : f32
    %84 = vector.broadcast %cst_44 : f32 to vector<8x64xf32>
    %85 = arith.cmpf ogt, %83, %84 : vector<8x64xf32>
    %86 = math.exp %83 : vector<8x64xf32>
    %87 = math.log1p %86 : vector<8x64xf32>
    %88 = arith.select %85, %83, %87 : vector<8x64xi1>, vector<8x64xf32>
    %c1_45 = arith.constant 1 : index
    %c0_46 = arith.constant 0 : index
    %c0_47 = arith.constant 0 : index
    %89 = vector.load %arg6[%c1_45, %c0_46, %c0_47] : memref<2x64x32xf32, #tpu.memory_space<vmem>>, vector<1x64x32xf32>
    %90 = vector.shape_cast %89 : vector<1x64x32xf32> to vector<64x32xf32>
    %cst_48 = arith.constant dense<0.000000e+00> : vector<8x32xf32>
    %91 = tpu.matmul %78, %90, %cst_48 {dimension_numbers = #tpu.dot_dimension_numbers<[1], [0], [0], [1], [0, 0, 1, 1], [], []>} : vector<8x64xf32>, vector<64x32xf32>, vector<8x32xf32> -> vector<8x32xf32>
    %92 = vector.extract_strided_slice %91 {offsets = [0, 0], sizes = [8, 16], strides = [1, 1]} : vector<8x32xf32> to vector<8x16xf32>
    %93 = vector.extract_strided_slice %91 {offsets = [0, 16], sizes = [8, 16], strides = [1, 1]} : vector<8x32xf32> to vector<8x16xf32>
    %94 = arith.mulf %92, %93 : vector<8x16xf32>
    %cst_49 = arith.constant dense<0.000000e+00> : vector<8xf32>
    %95 = vector.multi_reduction <add>, %94, %cst_49 [1] : vector<8x16xf32> to vector<8xf32>
    %96 = vector.shape_cast %95 : vector<8xf32> to vector<8x1xf32>
    %97 = vector.broadcast %96 : vector<8x1xf32> to vector<8x64xf32>
    %98 = arith.mulf %88, %97 : vector<8x64xf32>
    %99 = vector.broadcast %64 : vector<1x64xf32> to vector<8x64xf32>
    %100 = arith.addf %98, %99 : vector<8x64xf32>
    %101 = arith.mulf %78, %100 : vector<8x64xf32>
    %cst_50 = arith.constant 0.000000e+00 : f32
    %102 = vector.broadcast %cst_50 : f32 to vector<8x64xf32>
    %103 = arith.subf %102, %69 : vector<8x64xf32>
    %104 = math.exp %103 : vector<8x64xf32>
    %cst_51 = arith.constant 1.000000e+00 : f32
    %105 = vector.broadcast %cst_51 : f32 to vector<8x64xf32>
    %106 = arith.addf %105, %104 : vector<8x64xf32>
    %107 = tpu.reciprocal %106 {approx = true} : vector<8x64xf32> -> vector<8x64xf32>
    %108 = arith.mulf %69, %107 : vector<8x64xf32>
    %109 = arith.mulf %101, %108 : vector<8x64xf32>
    %c0_52 = arith.constant 0 : index
    %c0_53 = arith.constant 0 : index
    %110 = vector.load %arg9[%c0_52, %c0_53] : memref<1x64xf32, #tpu.memory_space<vmem>>, vector<1x64xf32>
    %111 = vector.broadcast %110 : vector<1x64xf32> to vector<8x64xf32>
    %112 = arith.mulf %109, %111 : vector<8x64xf32>
    %cst_54 = arith.constant dense<0.000000e+00> : vector<8xf32>
    %113 = vector.multi_reduction <add>, %112, %cst_54 [1] : vector<8x64xf32> to vector<8xf32>
    %114 = vector.shape_cast %113 : vector<8xf32> to vector<8x1xf32>
    %115 = vector.broadcast %1 : vector<1x1xf32> to vector<8x1xf32>
    %116 = arith.addf %114, %115 : vector<8x1xf32>
    %c0_55 = arith.constant 0 : index
    %c0_56 = arith.constant 0 : index
    %117 = vector.load %arg10[%c0_55, %c0_56] : memref<8x1xf32, #tpu.memory_space<vmem>>, vector<8x1xf32>
    tpu.vector_store %arg10[%c0_55, %c0_56], %116 {strides = array<i32>} : memref<8x1xf32, #tpu.memory_space<vmem>>, vector<8x1xf32>,
    return
  }
  func.func @transform_0(%arg0: i32) -> (i32, i32) {
    %c0_i32 = arith.constant 0 : i32
    %c0_i32_0 = arith.constant 0 : i32
    return %arg0, %c0_i32 : i32, i32
  }
  func.func @transform_1(%arg0: i32) -> (i32, i32) {
    %c0_i32 = arith.constant 0 : i32
    %c0_i32_0 = arith.constant 0 : i32
    %c0_i32_1 = arith.constant 0 : i32
    return %c0_i32, %c0_i32_0 : i32, i32
  }
  func.func @transform_2(%arg0: i32) -> (i32, i32) {
    %c0_i32 = arith.constant 0 : i32
    %c0_i32_0 = arith.constant 0 : i32
    %c0_i32_1 = arith.constant 0 : i32
    return %c0_i32, %c0_i32_0 : i32, i32
  }
  func.func @transform_3(%arg0: i32) -> (i32, i32, i32) {
    %c0_i32 = arith.constant 0 : i32
    %c0_i32_0 = arith.constant 0 : i32
    %c0_i32_1 = arith.constant 0 : i32
    %c0_i32_2 = arith.constant 0 : i32
    return %c0_i32, %c0_i32_0, %c0_i32_1 : i32, i32, i32
  }
  func.func @transform_4(%arg0: i32) -> (i32, i32, i32) {
    %c0_i32 = arith.constant 0 : i32
    %c0_i32_0 = arith.constant 0 : i32
    %c0_i32_1 = arith.constant 0 : i32
    %c0_i32_2 = arith.constant 0 : i32
    return %c0_i32, %c0_i32_0, %c0_i32_1 : i32, i32, i32
  }
  func.func @transform_5(%arg0: i32) -> (i32, i32, i32) {
    %c0_i32 = arith.constant 0 : i32
    %c0_i32_0 = arith.constant 0 : i32
    %c0_i32_1 = arith.constant 0 : i32
    %c0_i32_2 = arith.constant 0 : i32
    return %c0_i32, %c0_i32_0, %c0_i32_1 : i32, i32, i32
  }
  func.func @transform_6(%arg0: i32) -> (i32, i32, i32) {
    %c0_i32 = arith.constant 0 : i32
    %c0_i32_0 = arith.constant 0 : i32
    %c0_i32_1 = arith.constant 0 : i32
    %c0_i32_2 = arith.constant 0 : i32
    return %c0_i32, %c0_i32_0, %c0_i32_1 : i32, i32, i32
  }
  func.func @transform_7(%arg0: i32) -> (i32, i32, i32) {
    %c0_i32 = arith.constant 0 : i32
    %c0_i32_0 = arith.constant 0 : i32
    %c0_i32_1 = arith.constant 0 : i32
    %c0_i32_2 = arith.constant 0 : i32
    return %c0_i32, %c0_i32_0, %c0_i32_1 : i32, i32, i32
  }
  func.func @transform_8(%arg0: i32) -> (i32, i32) {
    %c0_i32 = arith.constant 0 : i32
    %c0_i32_0 = arith.constant 0 : i32
    %c0_i32_1 = arith.constant 0 : i32
    return %c0_i32, %c0_i32_0 : i32, i32
  }
  func.func @transform_9(%arg0: i32) -> (i32, i32) {
    %c0_i32 = arith.constant 0 : i32
    %c0_i32_0 = arith.constant 0 : i32
    return %arg0, %c0_i32 : i32, i32
  }
}

</mosaic_0001>

<bundles_post_ra>
// kernel: mamba_icl_forward.1
= control target key start
LH: loop header
LB: loop body
LE: loop exit
PB: predicated region body
PF: predicated region fallthrough
CT: control target
= control target key end

     0   :  { %14 = vsyncpa [#allocation3], 0  ;;  %s1561_s0 = inlined_call_operand.vmem [shape: f32[8,29], index: 0, kind: input, shape index: {}]   ;;  %s1562_s1 = inlined_call_operand.vmem [shape: f32[29,32], index: 1, kind: input, shape index: {}]   ;;  %s1563_s2 = inlined_call_operand.hbm [shape: f32[8,32], index: 2, kind: input, shape index: {}]   ;;  %s1564_s3 = inlined_call_operand.vmem [shape: f32[2,32,128], index: 3, kind: input, shape index: {}]   ;;  %s1565_s4 = inlined_call_operand.vmem [shape: f32[2,64,64], index: 4, kind: input, shape index: {}]   ;;  %s1566_s5 = inlined_call_operand.vmem [shape: f32[2,64,32], index: 5, kind: input, shape index: {}]   ;;  %s1567_s6 = inlined_call_operand.hbm [shape: f32[2,8,64], index: 6, kind: input, shape index: {}]   ;;  %s1568_s7 = inlined_call_operand.vmem [shape: f32[1,64,32], index: 7, kind: input, shape index: {}]   ;;  %s1569_s8 = inlined_call_operand.vmem [shape: f32[1,64], index: 8, kind: input, shape index: {}]   ;;  %s1570_s9 = inlined_call_operand.vmem [shape: f32[8,1], index: 9, kind: output, shape index: {}]  }
   0x1   :  { %15 = vsyncpa [#allocation5], 0  ;;  %s1222_s30 = smov [#allocation2]   ;;  %s1223_s11 = smov [#allocation4]  }
   0x2   :  { %s26_s10 = sshll.u32 %s1222_s30, 4  ;;  %s41_s12 = sshll.u32 %s1223_s11, 4  ;;  %s27_s10 = int_to_ptr.vmem [resolvable:$true] %s26_s10  ;;  %s1282_s12 = int_to_ptr.vmem [resolvable:$true] %s41_s12 }
   0x3   :  { %s1174_s15 = scalar_lea.hbm %s1563_s2, 128 }
   0x4   :  { %p1175_p0 = scmp.ne.s32.totalorder %s1563_s2, %s1174_s15  ;;  %p1178_p1 = scmp.lt.u32.totalorder %s1174_s15, %s1563_s2 }
   0x6   :  { %p1180_p2 = pnand %p1178_p1, %p1175_p0 }
   0x8   :  { %1183 = shalt.err (!%p1180_p2)
}
   0x9   :  { %s1184_s20 = scalar_lea.vmem %s27_s10, 128  ;;  %p1189_p4 = scmp.lt.s32.totalorder %s27_s10, %s27_s10 }
   0xa   :  { %p1185_p3 = scmp.ne.s32.totalorder %s27_s10, %s1184_s20  ;;  %p1190_p5 = scmp.lt.s32.totalorder %s1184_s20, %s1184_s20 }
   0xc   :  { %p1191_p6 = por %p1190_p5, %p1189_p4 }
   0xe   :  { %p1192_p7 = pnand %p1191_p6, %p1185_p3 }
  0x10   :  { %1195 = shalt.err (!%p1192_p7)
}
  0x11   :  { %29 = dma.hbm_to_vmem [thread:$0]  %s1563_s2, 128, %s27_s10, [#allocation3]  }
  0x12   :  { %s1196_s25 = scalar_lea.hbm %s1567_s6, 256 }
  0x13   :  { %p1197_p8 = scmp.ne.s32.totalorder %s1567_s6, %s1196_s25  ;;  %p1200_p9 = scmp.lt.u32.totalorder %s1196_s25, %s1567_s6 }
  0x15   :  { %p1202_p10 = pnand %p1200_p9, %p1197_p8 }
  0x17   :  { %1205 = shalt.err (!%p1202_p10)
}
  0x18   :  { %s1206_s30 = scalar_lea.vmem %s1282_s12, 256  ;;  %p1211_p12 = scmp.lt.s32.totalorder %s1282_s12, %s1282_s12 }
  0x19   :  { %p1207_p11 = scmp.ne.s32.totalorder %s1282_s12, %s1206_s30  ;;  %p1212_p13 = scmp.lt.s32.totalorder %s1206_s30, %s1206_s30 }
  0x1b   :  { %p1213_p0 = por %p1212_p13, %p1211_p12 }
  0x1d   :  { %p1214_p1 = pnand %p1213_p0, %p1207_p11 }
  0x1f   :  { %1217 = shalt.err (!%p1214_p1)
}
  0x20   :  { %s1224_s2 = smov 128   ;;  %s1225_s10 = smov 8  }
  0x21   :  { %47 = dma.hbm_to_vmem [thread:$0]  %s1567_s6, 256, %s1282_s12, [#allocation5], %s1224_s2, %s1224_s2, %s1225_s10  }
  0x22   :  { %1218 = dma.done.wait [#allocation3], 128  }
  0x23   :  { %1219 = vsyncadd [#allocation3], 4294967168 }
  0x24   :  { %1220 = dma.done.wait [#allocation5], 256  }
  0x25   :  { %1221 = vsyncadd [#allocation5], 4294967040  ;;  %v1226_v0 = vmov 0.0|0.0   ;;  %vm1227_vm0 = vmmov 0   ;;  %v1228_v1 = vmov 0.0   ;;  %v61_v2 = vld [vmem:[%s1562_s1] sm:$0xff]  ;;  %v226_v43 = vlaneseq }
  0x26   :  { %1061 = vmatprep.subr.bf16.mxu0 %v1226_v0  ;;  %1068 = vmatprep.subr.bf16.mxu1 %v1226_v0  ;;  %v62_v3 = vld [vmem:[%s1562_s1 + $0x8] sm:$0xff]  ;;  %v63_v4 = vld [vmem:[%s1562_s1 + $0x10] sm:$0xff]  ;;  %v64_v6 = vld [vmem:[%s1562_s1 + $0x18] sm:$0x1f]  ;;  %vm73_vm1 = vcmask 1044480   ;;  %vm1229_vm2 = vmmov 1  }
  0x27   :  { %941 = vmatprep.mubr.msk.f32.mxu0 %vm1227_vm0, %v1228_v1  ;;  %952 = vmatprep.mubr.msk.f32.mxu1 %vm1227_vm0, %v1228_v1  ;;  %v1062_v5 = vpack.c.bf16 %v62_v3, %v61_v2  ;;  %v148_v7 = vld [vmem:[%s1564_s3] sm:$0xff]  ;;  %v149_v8 = vld [vmem:[%s1564_s3 + $0x8] sm:$0xff]  ;;  %v1065_v9 = vpack.c.bf16 %v64_v6, %v63_v4  ;;  %vm1066_vm3 = vmpackc.low %vm73_vm1, %vm1229_vm2  ;;  %vm69_vm4 = vcmask 236544   ;;  %vm152_vm5 = vcmask 261120   ;;  %s1230_s14 = smov 64   ;;  %s1231_s21 = smov 112  }
  0x28   :  { %v1069_v10 = vpack.c.bf16 %v149_v8, %v148_v7  ;;  %v60_v11 = vld [vmem:[%s1561_s0] sm:$0xff]  ;;  %v150_v12 = vld [vmem:[%s1564_s3 + $0x10] sm:$0xff]  ;;  %v151_v13 = vld [vmem:[%s1564_s3 + $0x18] sm:$0xff]  ;;  %v1411_v44 = vshrl.u32 %v226_v43, 7  ;;  %vm249_vm6 = vcmask 523264   ;;  %vm419_vm7 = vcmask 130048  }
  0x29   :  { %1063 = vmatpush3.bf16.msra.mxu0 %v1062_v5  ;;  %v1072_v14 = vpack.c.bf16 %v151_v13, %v150_v12  ;;  %v841_v15 = vld [vmem:[#allocation2] ss:$0 sm:$0xff]  ;;  %v238_v20 = vld [vmem:[%s1565_s4 + $0x8] sm:$0xff]  ;;  %v239_v25 = vld [vmem:[%s1565_s4 + $0x10] sm:$0xff]  ;;  %vm833_vm12 = vcmask 7168  }
  0x2a   :  { %1064 = vmatprep.subr.bf16.mxu0 %v1226_v0  ;;  %1070 = vmatpush3.bf16.msra.mxu1 %v1069_v10  ;;  %v237_v19 = vld [vmem:[%s1565_s4] sm:$0xff]  ;;  %v337_v23 = vld [vmem:[%s1566_s5 + $0x8] sm:$0xff]  ;;  %v240_v26 = vld [vmem:[%s1565_s4 + $0x18] sm:$0xff]  ;;  %v228_v45 = vsub.s32 0, %v1411_v44 }
  0x2b   :  { %1071 = vmatprep.subr.bf16.mxu1 %v1226_v0  ;;  %v336_v21 = vld [vmem:[%s1566_s5] sm:$0xff]  ;;  %v1075_v22 = vpack.c.bf16 %v238_v20, %v237_v19  ;;  %v338_v27 = vld [vmem:[%s1566_s5 + $0x10] sm:$0xff]  ;;  %v1078_v28 = vpack.c.bf16 %v240_v26, %v239_v25  ;;  %v339_v29 = vld [vmem:[%s1566_s5 + $0x18] sm:$0xff]  ;;  %v247_v26 = vsub.s32 1, %v1411_v44 }
  0x2c   :  { %v1087_v24 = vpack.c.bf16 %v337_v23, %v336_v21  ;;  %v1090_v30 = vpack.c.bf16 %v339_v29, %v338_v27  ;;  %v241_v31 = vld [vmem:[%s1565_s4 + $0x20] sm:$0xff]  ;;  %v242_v32 = vld [vmem:[%s1565_s4 + $0x28] sm:$0xff]  ;;  %v243_v37 = vld [vmem:[%s1565_s4 + $0x30] sm:$0xff] }
  0x2d   :  { %1067 = vmatpush3.bf16.msk.msra.mxu0 %vm1066_vm3, %v1065_v9  ;;  %v340_v33 = vld [vmem:[%s1566_s5 + $0x20] sm:$0xff]  ;;  %v1081_v34 = vpack.c.bf16 %v242_v32, %v241_v31  ;;  %v341_v35 = vld [vmem:[%s1566_s5 + $0x28] sm:$0xff]  ;;  %v244_v38 = vld [vmem:[%s1565_s4 + $0x38] sm:$0xff] }
  0x2e   :  { %1074 = vmatprep.subr.bf16.mxu0 %v1226_v0  ;;  %1073 = vmatpush3.bf16.msra.mxu1 %v1072_v14  ;;  %v1093_v36 = vpack.c.bf16 %v341_v35, %v340_v33  ;;  %v342_v39 = vld [vmem:[%s1566_s5 + $0x30] sm:$0xff]  ;;  %v1084_v40 = vpack.c.bf16 %v244_v38, %v243_v37  ;;  %v343_v41 = vld [vmem:[%s1566_s5 + $0x38] sm:$0xff]  ;;  %v1414_v46 = vld [vmem:[#allocation4] sm:$0xff]  ;;  %v426_v38 = vsub.s32 2, %v1411_v44 }
  0x2f   :  { %1086 = vmatprep.subr.bf16.mxu1 %v1226_v0  ;;  %v1096_v42 = vpack.c.bf16 %v343_v41, %v342_v39  ;;  %v229_v47 = vrot.slane %v1414_v46, %v228_v45  ;;  %v441_v63 = vld [vmem:[%s1568_s7] sm:$0xff]  ;;  %v442_v2 = vld [vmem:[%s1568_s7 + $0x8] sm:$0xff]  ;;  %v443_v3 = vld [vmem:[%s1568_s7 + $0x10] sm:$0xff]  ;;  %v248_v27 = vrot.slane %v1414_v46, %v247_v26 }
  0x30   :  { %942 = vmatmul.mubr.msk.f32.vlgmr.msra.gmra.mrb[0].mxu0 %vm69_vm4, %v60_v11  ;;  %v1099_v4 = vpack.c.bf16 %v442_v2, %v441_v63  ;;  %v444_v5 = vld [vmem:[%s1568_s7 + $0x18] sm:$0xff]  ;;  %v445_v14 = vld [vmem:[%s1568_s7 + $0x20] sm:$0xff]  ;;  %v849_v21 = vld [vmem:[%s1564_s3 + $0x28] sm:$0xff] }
  0x31   :  { %971 = vmatprep.mubr.msk.f32.mxu0 %vm1227_vm0, %v1228_v1  ;;  %1076 = vmatpush3.bf16.msra.mxu0 %v1075_v22  ;;  %v1102_v6 = vpack.c.bf16 %v444_v5, %v443_v3  ;;  %v848_v20 = vld [vmem:[%s1564_s3 + $0x20] sm:$0xff]  ;;  %v850_v22 = vld [vmem:[%s1564_s3 + $0x30] sm:$0xff]  ;;  %v858_v2 = vld [vmem:[%s1565_s4 + $0x68] sm:$0xff] }
  0x32   :  { %1077 = vmatprep.subr.bf16.mxu0 %v1226_v0  ;;  %v1111_v23 = vpack.c.bf16 %v849_v21, %v848_v20  ;;  %v857_v63 = vld [vmem:[%s1565_s4 + $0x60] sm:$0xff]  ;;  %v867_v5 = vld [vmem:[%s1566_s5 + $0x68] sm:$0xff] }
  0x33   :  { %v866_v3 = vld [vmem:[%s1566_s5 + $0x60] sm:$0xff] }
  0x35   :  { %1079 = vmatpush3.bf16.msra.mxu0 %v1078_v28 }
  0x36   :  { %1080 = vmatprep.subr.bf16.mxu0 %v1226_v0 }
  0x39   :  { %1082 = vmatpush3.bf16.msra.mxu0 %v1081_v34 }
  0x3a   :  { %1083 = vmatprep.subr.bf16.mxu0 %v1226_v0 }
  0x3d   :  { %1085 = vmatpush3.bf16.msra.mxu0 %v1084_v40  ;;  %v427_v40 = vrot.slane %v1414_v46, %v426_v38  ;;  %v853_v46 = vld [vmem:[%s1565_s4 + $0x40] sm:$0xff] }
  0x3e   :  { %1098 = vmatprep.subr.bf16.mxu0 %v1226_v0 }
 0x103   :  { %v143_v16 = vpop.f32.mrb[0].mxu0 }
 0x104   :  { %v144_v17 = vadd.f32 %v841_v15, %v143_v16  ;;  %v943_v18 = vpop.f32.mrb[1].mxu0  ;;  %v446_v15 = vld [vmem:[%s1568_s7 + $0x28] sm:$0xff] }
 0x105   :  { %v1105_v16 = vpack.c.bf16 %v446_v15, %v445_v14  ;;  %v448_v18 = vld [vmem:[%s1568_s7 + $0x38] sm:$0xff] }
 0x106   :  { %953 = vmatmul.mubr.msk.f32.vlgmr.msra.gmra.mrb[0].mxu1 %vm152_vm5, %v144_v17  ;;  %v447_v17 = vld [vmem:[%s1568_s7 + $0x30] sm:$0xff] }
 0x107   :  { %990 = vmatprep.mubr.msk.f32.mxu1 %vm1227_vm0, %v1228_v1  ;;  %1088 = vmatpush3.bf16.msra.mxu1 %v1087_v24  ;;  %v1108_v19 = vpack.c.bf16 %v448_v18, %v447_v17  ;;  %v851_v24 = vld [vmem:[%s1564_s3 + $0x38] sm:$0xff] }
 0x108   :  { %1089 = vmatprep.subr.bf16.mxu1 %v1226_v0  ;;  %v1114_v25 = vpack.c.bf16 %v851_v24, %v850_v22 }
 0x10b   :  { %1091 = vmatpush3.bf16.msra.mxu1 %v1090_v30 }
 0x10c   :  { %1092 = vmatprep.subr.bf16.mxu1 %v1226_v0 }
 0x10f   :  { %1094 = vmatpush3.bf16.msra.mxu1 %v1093_v36 }
 0x110   :  { %1095 = vmatprep.subr.bf16.mxu1 %v1226_v0 }
 0x113   :  { %1097 = vmatpush3.bf16.msra.mxu1 %v1096_v42 }
 0x114   :  { %1110 = vmatprep.subr.bf16.mxu1 %v1226_v0 }
 0x1d9   :  { %v222_v48 = vpop.f32.mrb[0].mxu1 }
 0x1da   :  { %v230_v49 = vadd.f32 %v229_v47, %v222_v48  ;;  %v430_v50 = vsub.f32 0.0, %v222_v48  ;;  %v954_v51 = vpop.f32.mrb[1].mxu1 }
 0x1dc   :  { %v231_v52 = vsub.f32 0.0, %v230_v49  ;;  %v431_v53 = vmul.f32 1.442695, %v430_v50 }
 0x1de   :  { %v232_v54 = vmul.f32 1.442695, %v231_v52  ;;  %1150 = vpow2.f32 %v431_v53  ;;  %v854_v53 = vld [vmem:[%s1565_s4 + $0x48] sm:$0xff] }
 0x1e0   :  { %1152 = vpow2.f32 %v232_v54  ;;  %v862_v54 = vld [vmem:[%s1566_s5 + $0x40] sm:$0xff] }
 0x1e8   :  { %v1151_v55 = vpop.eup %1150 }
 0x1e9   :  { %v433_v56 = vadd.f32 1.0, %v1151_v55  ;;  %v1117_v55 = vpack.c.bf16 %v854_v53, %v853_v46 }
 0x1ea   :  { %v1153_v57 = vpop.eup %1152 }
 0x1eb   :  { %v234_v58 = vadd.f32 1.0, %v1153_v57  ;;  %1154 = vrcp.f32 %v433_v56  ;;  %v863_v56 = vld [vmem:[%s1566_s5 + $0x48] sm:$0xff] }
 0x1ec   :  { %v1129_v57 = vpack.c.bf16 %v863_v56, %v862_v54 }
 0x1ed   :  { %1156 = vrcp.f32 %v234_v58  ;;  %v856_v58 = vld [vmem:[%s1565_s4 + $0x58] sm:$0xff] }
 0x1f5   :  { %v1155_v59 = vpop.eup %1154 }
 0x1f6   :  { %v435_v60 = vmul.f32 %v1155_v59, %v222_v48  ;;  %v864_v59 = vld [vmem:[%s1566_s5 + $0x50] sm:$0xff] }
 0x1f7   :  { %v1157_v61 = vpop.eup %1156 }
 0x1f8   :  { %v1419_v62 = vmul.f32 %v1157_v61, %v230_v49  ;;  %437 = vrot.lane.b32.xlu1 %v435_v60, %s1230_s14  ;;  %v865_v61 = vld [vmem:[%s1566_s5 + $0x58] sm:$0xff] }
 0x1fa   :  { %972 = vmatmul.mubr.msk.f32.vlgmr.msra.gmra.mrb[2].mxu0 %vm249_vm6, %v1419_v62  ;;  %991 = vmatmul.mubr.msk.f32.vlgmr.msra.gmra.mrb[2].mxu1 %vm249_vm6, %v1419_v62 }
 0x1fb   :  { %1009 = vmatprep.mubr.msk.f32.mxu0 %vm1227_vm0, %v1228_v1  ;;  %1020 = vmatprep.mubr.msk.f32.mxu1 %vm1227_vm0, %v1228_v1 }
 0x1fc   :  { %1100 = vmatpush3.bf16.msra.mxu0 %v1099_v4  ;;  %1112 = vmatpush3.bf16.msra.mxu1 %v1111_v23  ;;  %v1123_v4 = vpack.c.bf16 %v858_v2, %v857_v63 }
 0x1fd   :  { %1101 = vmatprep.subr.bf16.mxu0 %v1226_v0  ;;  %1113 = vmatprep.subr.bf16.mxu1 %v1226_v0 }
 0x200   :  { %1103 = vmatpush3.bf16.msra.mxu0 %v1102_v6  ;;  %1115 = vmatpush3.bf16.msra.mxu1 %v1114_v25  ;;  %v1135_v6 = vpack.c.bf16 %v867_v5, %v866_v3 }
 0x201   :  { %1104 = vmatprep.subr.bf16.mxu0 %v1226_v0  ;;  %1116 = vmatprep.subr.bf16.mxu1 %v1226_v0 }
 0x204   :  { %1106 = vmatpush3.bf16.msra.mxu0 %v1105_v16 }
 0x205   :  { %1107 = vmatprep.subr.bf16.mxu0 %v1226_v0 }
 0x208   :  { %1109 = vmatpush3.bf16.msra.mxu0 %v1108_v19 }
 0x209   :  { %1128 = vmatprep.subr.bf16.mxu0 %v1226_v0 }
 0x26a   :  { %v438_v49 = vpop.permute.xlu1 %437 }
 0x2cd   :  { %v319_v7 = vpop.f32.mrb[2].mxu0  ;;  %v410_v8 = vpop.f32.mrb[2].mxu1 }
 0x2ce   :  { %v973_v9 = vpop.f32.mrb[3].mxu0  ;;  %415 = vrot.lane.b32.xlu0 %v410_v8, %s1231_s21  ;;  %v992_v10 = vpop.f32.mrb[3].mxu1  ;;  %v320_v28 = vadd.f32 %v319_v7, %v248_v27  ;;  %v859_v7 = vld [vmem:[%s1565_s4 + $0x70] sm:$0xff] }
 0x2cf   :  { %v868_v9 = vld [vmem:[%s1566_s5 + $0x70] sm:$0xff] }
 0x2d0   :  { %v324_v29 = vmul.f32 1.442695, %v320_v28  ;;  %vm323_vm9 = vcmp.gt.f32.partialorder %v320_v28, 20.0 }
 0x2d2   :  { %1158 = vpow2.f32 %v324_v29 }
 0x2dc   :  { %v1159_v30 = vpop.eup %1158 }
 0x2dd   :  { %v326_v31 = vadd.f32 1.0, %v1159_v30  ;;  %v329_v32 = vmul.f32 -0.5, %v1159_v30  ;;  %v332_v35 = vand.u32 2147483647, %v1159_v30 }
 0x2df   :  { %1160 = vlog2.f32 %v326_v31  ;;  %v330_v34 = vadd.f32 1.0, %v329_v32  ;;  %vm333_vm8 = vcmp.lt.f32.partialorder %v332_v35, 0.0004427343 }
 0x2e1   :  { %v331_v37 = vmul.f32 %v1159_v30, %v330_v34 }
 0x2e9   :  { %v1161_v33 = vpop.eup %1160 }
 0x2ea   :  { %v328_v36 = vmul.f32 0.6931472, %v1161_v33 }
 0x2ec   :  { %v334_v39 = vsel %vm333_vm8, %v331_v37, %v328_v36 }
 0x2ed   :  { %v335_v41 = vsel %vm323_vm9, %v320_v28, %v334_v39 }
 0x340   :  { %v416_v11 = vpop.permute.xlu0 %415 }
 0x341   :  { %v418_v12 = vmul.f32 %v416_v11, %v410_v8  ;;  %v860_v8 = vld [vmem:[%s1565_s4 + $0x78] sm:$0xff] }
 0x342   :  { %v1126_v10 = vpack.c.bf16 %v860_v8, %v859_v7  ;;  %v869_v11 = vld [vmem:[%s1566_s5 + $0x78] sm:$0xff] }
 0x343   :  { %v420_v13 = vsel %vm419_vm7, %v418_v12, 0.0  ;;  %v1138_v12 = vpack.c.bf16 %v869_v11, %v868_v9 }
 0x344   :  { %421 = vadd.xlane.f32.xlu0 %v420_v13  ;;  %v523_v13 = vld [vmem:[#allocation4 + $0x8] sm:$0xff] }
 0x345   :  { %v605_v14 = vrot.slane %v523_v13, %v228_v45  ;;  %v625_v36 = vrot.slane %v523_v13, %v247_v26 }
 0x3d1   :  { %v422_v42 = vpop.xlane.xlu0 %421 }
 0x3d2   :  { %v423_v43 = vmul.f32 %v422_v42, %v335_v41 }
 0x3d4   :  { %v428_v47 = vadd.f32 %v427_v40, %v423_v43 }
 0x3d6   :  { %v429_v48 = vmul.f32 %v428_v47, %v1419_v62  ;;  %v1132_v62 = vpack.c.bf16 %v865_v61, %v864_v59 }
 0x3d8   :  { %v440_v50 = vmul.f32 %v438_v49, %v429_v48 }
 0x3da   :  { %1010 = vmatmul.mubr.msk.f32.vlgmr.msra.gmra.mrb[4].mxu0 %vm249_vm6, %v440_v50 }
 0x3db   :  { %1058 = vmatprep.mubr.msk.f32.mxu0 %vm1227_vm0, %v1228_v1  ;;  %1130 = vmatpush3.bf16.msra.mxu0 %v1129_v57  ;;  %v871_v57 = vld [vmem:[%s1569_s8] ss:$0 sm:$0xff] }
 0x3dc   :  { %1131 = vmatprep.subr.bf16.mxu0 %v1226_v0 }
 0x3df   :  { %1133 = vmatpush3.bf16.msra.mxu0 %v1132_v62 }
 0x3e0   :  { %1134 = vmatprep.subr.bf16.mxu0 %v1226_v0 }
 0x3e3   :  { %1136 = vmatpush3.bf16.msra.mxu0 %v1135_v6 }
 0x3e4   :  { %1137 = vmatprep.subr.bf16.mxu0 %v1226_v0 }
 0x3e7   :  { %1139 = vmatpush3.bf16.msra.mxu0 %v1138_v12 }
 0x4ad   :  { %v518_v51 = vpop.f32.mrb[4].mxu0 }
 0x4ae   :  { %v1011_v52 = vpop.f32.mrb[5].mxu0  ;;  %1021 = vmatmul.mubr.msk.f32.vlgmr.msra.gmra.mrb[4].mxu1 %vm152_vm5, %v518_v51 }
 0x4af   :  { %1039 = vmatprep.mubr.msk.f32.mxu1 %vm1227_vm0, %v1228_v1  ;;  %1118 = vmatpush3.bf16.msra.mxu1 %v1117_v55  ;;  %v855_v1 = vld [vmem:[%s1565_s4 + $0x50] sm:$0xff]  ;;  %v803_v52 = vrot.slane %v523_v13, %v426_v38 }
 0x4b0   :  { %1119 = vmatprep.subr.bf16.mxu1 %v1226_v0  ;;  %v1120_v60 = vpack.c.bf16 %v856_v58, %v855_v1 }
 0x4b3   :  { %1121 = vmatpush3.bf16.msra.mxu1 %v1120_v60  ;;  %v872_v60 = vld [vmem:[#allocation2 + $0x1] ss:$0 sm:$0xff] }
 0x4b4   :  { %1122 = vmatprep.subr.bf16.mxu1 %v1226_v0 }
 0x4b7   :  { %1124 = vmatpush3.bf16.msra.mxu1 %v1123_v4 }
 0x4b8   :  { %1125 = vmatprep.subr.bf16.mxu1 %v1226_v0 }
 0x4bb   :  { %1127 = vmatpush3.bf16.msra.mxu1 %v1126_v10 }
 0x581   :  { %v598_v15 = vpop.f32.mrb[4].mxu1 }
 0x582   :  { %v606_v16 = vadd.f32 %v605_v14, %v598_v15  ;;  %v806_v17 = vsub.f32 0.0, %v598_v15  ;;  %v1022_v18 = vpop.f32.mrb[5].mxu1 }
 0x584   :  { %v607_v19 = vsub.f32 0.0, %v606_v16  ;;  %v807_v20 = vmul.f32 1.442695, %v806_v17 }
 0x586   :  { %v608_v21 = vmul.f32 1.442695, %v607_v19  ;;  %1162 = vpow2.f32 %v807_v20 }
 0x588   :  { %1164 = vpow2.f32 %v608_v21 }
 0x590   :  { %v1163_v0 = vpop.eup %1162 }
 0x591   :  { %v809_v22 = vadd.f32 1.0, %v1163_v0 }
 0x592   :  { %v1165_v23 = vpop.eup %1164 }
 0x593   :  { %v610_v24 = vadd.f32 1.0, %v1165_v23  ;;  %1166 = vrcp.f32 %v809_v22 }
 0x595   :  { %1168 = vrcp.f32 %v610_v24 }
 0x59d   :  { %v1167_v25 = vpop.eup %1166 }
 0x59e   :  { %v811_v27 = vmul.f32 %v1167_v25, %v598_v15 }
 0x59f   :  { %v1169_v28 = vpop.eup %1168 }
 0x5a0   :  { %v612_v29 = vmul.f32 %v1169_v28, %v606_v16  ;;  %813 = vrot.lane.b32.xlu0 %v811_v27, %s1230_s14 }
 0x5a2   :  { %1040 = vmatmul.mubr.msk.f32.vlgmr.msra.gmra.mrb[6].mxu1 %vm249_vm6, %v612_v29  ;;  %1059 = vmatmul.mubr.msk.f32.vlgmr.msra.gmra.mrb[6].mxu0 %vm249_vm6, %v612_v29 }
 0x612   :  { %v814_v56 = vpop.permute.xlu0 %813 }
 0x675   :  { %v695_v45 = vpop.f32.mrb[6].mxu1  ;;  %v787_v30 = vpop.f32.mrb[6].mxu0 }
 0x676   :  { %792 = vrot.lane.b32.xlu1 %v787_v30, %s1231_s21  ;;  %v1041_v31 = vpop.f32.mrb[7].mxu1  ;;  %v1060_v32 = vpop.f32.mrb[7].mxu0  ;;  %v696_v37 = vadd.f32 %v695_v45, %v625_v36 }
 0x678   :  { %v700_v39 = vmul.f32 1.442695, %v696_v37  ;;  %vm699_vm11 = vcmp.gt.f32.partialorder %v696_v37, 20.0 }
 0x67a   :  { %1170 = vpow2.f32 %v700_v39 }
 0x684   :  { %v1171_v40 = vpop.eup %1170 }
 0x685   :  { %v702_v41 = vadd.f32 1.0, %v1171_v40  ;;  %v705_v42 = vmul.f32 -0.5, %v1171_v40  ;;  %v708_v48 = vand.u32 2147483647, %v1171_v40 }
 0x687   :  { %1172 = vlog2.f32 %v702_v41  ;;  %v706_v47 = vadd.f32 1.0, %v705_v42  ;;  %vm709_vm10 = vcmp.lt.f32.partialorder %v708_v48, 0.0004427343 }
 0x689   :  { %v707_v50 = vmul.f32 %v1171_v40, %v706_v47 }
 0x691   :  { %v1173_v43 = vpop.eup %1172 }
 0x692   :  { %v704_v49 = vmul.f32 0.6931472, %v1173_v43 }
 0x694   :  { %v710_v51 = vsel %vm709_vm10, %v707_v50, %v704_v49 }
 0x695   :  { %v711_v26 = vsel %vm699_vm11, %v696_v37, %v710_v51 }
 0x6e8   :  { %v793_v33 = vpop.permute.xlu1 %792 }
 0x6e9   :  { %v795_v34 = vmul.f32 %v793_v33, %v787_v30 }
 0x6eb   :  { %v796_v35 = vsel %vm419_vm7, %v795_v34, 0.0 }
 0x6ec   :  { %797 = vadd.xlane.f32.xlu1 %v796_v35 }
 0x779   :  { %v798_v46 = vpop.xlane.xlu1 %797 }
 0x77a   :  { %v799_v53 = vmul.f32 %v798_v46, %v711_v26 }
 0x77c   :  { %v804_v54 = vadd.f32 %v803_v52, %v799_v53 }
 0x77e   :  { %v805_v55 = vmul.f32 %v804_v54, %v612_v29 }
 0x780   :  { %v816_v1 = vmul.f32 %v814_v56, %v805_v55 }
 0x782   :  { %v824_v58 = vmul.f32 %v871_v57, %v816_v1 }
 0x784   :  { %v825_v59 = vsel %vm249_vm6, %v824_v58, 0.0 }
 0x785   :  { %826 = vadd.xlane.f32.xlu1 %v825_v59 }
 0x812   :  { %v827_v44 = vpop.xlane.xlu1 %826 }
 0x813   :  { %v832_v38 = vadd.f32 %v872_v60, %v827_v44 }
 0x815   :  { %834 = vst.msk [vmem:[%s1570_s9] sm:$0xff] %vm833_vm12, %v832_v38 }
 0x816   :  { %839 = vsyncpa [#allocation3], 1 }
 0x817   :  { %840 = vsyncpa [#allocation5], 1 }

</bundles_post_ra>
